<compile_context>
chip_gen: v6e
topology: v6e:2x2x1
jax: 0.10.0
libtpu: 0.0.40
codegen_flags: <defaults>
</compile_context>

<pallas_src>
import functools

import jax
import jax.numpy as jnp
from jax import lax
from jax.experimental import pallas as pl
from jax.experimental.pallas import tpu as pltpu

_LANE = 128


def _tpu_generation():
    try:
        kind = jax.devices()[0].device_kind.lower()
    except Exception:
        return "unknown"
    if "v7" in kind or "7x" in kind:
        return "v7x"
    if "v6" in kind:
        return "v6e"
    if "v5p" in kind:
        return "v5p"
    if "v5" in kind:
        return "v5e"
    if "v4" in kind:
        return "v4"
    return "unknown"


def _residual_conv1x1_kernel(x_ref, w_ref, b_ref, o_ref, *, bn, downcast_x):
    """o[i] = W @ x[i] + x[i] + b  for each image i of the (bn, C, TM) block."""
    w = w_ref[...]                        # (C, C)  resident, already matmul dtype
    b = b_ref[...]                        # (C, 1)  resident, f32

    def one(i):
        xi = x_ref[i]                                             # (C, TM)
        rhs = xi.astype(jnp.bfloat16) if downcast_x else xi
        y = jnp.dot(w, rhs, preferred_element_type=jnp.float32)   # MXU
        # Epilogue on the VPU in f32: residual add + bias broadcast.
        o_ref[i] = (y + xi.astype(jnp.float32) + b).astype(o_ref.dtype)

    if bn <= 8:
        for i in range(bn):               # short static unroll: full LLO visibility
            one(i)
    else:
        def body(i, carry):
            one(i)
            return carry
        lax.fori_loop(0, bn, body, 0)


def _plan_tiles(n, c, hw_pad, x_item, w_item, x_is_f32, downcast_x, cap_bytes,
                target_bytes=2 << 20):
    """Pick (bn, tm) so each grid step streams ~target_bytes of x, plus a VMEM
    budget that counts every in-kernel buffer (not just the x tile)."""

    def footprint(bn, tm):
        tile = bn * c * tm
        inner = c * tm
        need = 2 * tile * x_item          # x tiles, double-buffered
        need += 2 * tile * x_item         # out tiles, double-buffered
        need += inner * 4                 # f32 matmul result
        if not x_is_f32:
            need += inner * 4             # f32 residual copy of bf16 x
        if downcast_x:
            need += inner * 2             # bf16 operand copy of f32 x
        need += 2 * c * c * w_item        # resident weight (kernel dtype, 2 bufs)
        need += 2 * c * 4                 # resident bias (2 bufs)
        return need

    tgt = target_bytes
    while True:
        tm = (tgt // max(1, c * x_item)) // _LANE * _LANE
        tm = max(_LANE, min(tm, hw_pad))
        if tm >= hw_pad:
            tm = hw_pad                   # small map: fold batch into the block
            bn = max(1, tgt // max(1, c * hw_pad * x_item))
            bn = min(bn, n, 64)           # keep the in-kernel batch loop short
            if n >= 2:
                bn = min(bn, -(-n // 2))  # keep >=2 grid steps (feed both v7x TCs)
            bn = max(bn, 1)
        else:
            bn = 1
        need = footprint(bn, tm)
        if need + need // 4 <= cap_bytes or (tm <= _LANE and bn <= 1):
            return bn, tm, need
        tgt //= 2                         # shrink until it fits the scoped VMEM cap


@functools.partial(jax.jit, static_argnames=("use_bf16_matmul",))
def residual_conv1x1(x_nchw, weight, bias, *, use_bf16_matmul=None):
    """Residual(Conv2d(C, C, kernel_size=1)) forward: y = W@x + b + x  (NCHW)."""
    n, c, h, w = x_nchw.shape
    hw = h * w
    x_dtype = x_nchw.dtype

    if weight.ndim == 4:                  # torch-style (C_out, C_in, 1, 1)
        weight = weight.reshape(weight.shape[0], weight.shape[1])

    gen = _tpu_generation()
    # Scoped-VMEM cap: v4/v5/v6 have 128 MiB physical VMEM; v7x only 64 MiB.
    cap_bytes = {"v4": 64 << 20, "v5e": 64 << 20, "v5p": 64 << 20,
                 "v6e": 64 << 20, "v7x": 40 << 20}.get(gen, 40 << 20)
    # bf16-MXU crossover for f32 activations (memory-bound below it; only v5e's
    # weak f32 MXU binds early).  Unknown generation -> keep f32 (numerics-safe).
    bf16_thr = {"v4": 256, "v5e": 128, "v5p": 256,
                "v6e": 512, "v7x": 1024}.get(gen, 1 << 30)

    if x_dtype == jnp.bfloat16:
        matmul_dtype = jnp.bfloat16       # pure-bf16 matmul, no silent promotion
    elif use_bf16_matmul is None:
        matmul_dtype = jnp.bfloat16 if c >= bf16_thr else jnp.float32
    else:
        matmul_dtype = jnp.bfloat16 if use_bf16_matmul else jnp.float32
    downcast_x = (x_dtype == jnp.float32) and (matmul_dtype == jnp.bfloat16)

    w2d = weight.astype(matmul_dtype)     # cast ONCE in the wrapper, not per tile
    b2d = bias.reshape(c, 1).astype(jnp.float32)

    # Free reshape; pad HW to a lane multiple only if needed so every output
    # store is an unmasked, lane-dense vst (padded tail sliced off below).
    x3d = x_nchw.reshape(n, c, hw)
    hw_pad = -(-hw // _LANE) * _LANE
    if hw_pad != hw:
        x3d = jnp.pad(x3d, ((0, 0), (0, 0), (0, hw_pad - hw)))

    x_item = jnp.dtype(x_dtype).itemsize
    w_item = jnp.dtype(matmul_dtype).itemsize
    bn, tm, need = _plan_tiles(n, c, hw_pad, x_item, w_item,
                               x_dtype == jnp.float32, downcast_x, cap_bytes)
    vmem_limit = int(min(cap_bytes, max(4 << 20, need + need // 2)))

    grid = (pl.cdiv(n, bn), pl.cdiv(hw_pad, tm))

    kernel = functools.partial(_residual_conv1x1_kernel,
                               bn=bn, downcast_x=downcast_x)

    out3d = pl.pallas_call(
        kernel,
        out_shape=jax.ShapeDtypeStruct((n, c, hw_pad), x_dtype),
        grid_spec=pltpu.PrefetchScalarGridSpec(
            num_scalar_prefetch=0,
            grid=grid,
            in_specs=[
                # Streaming x block.  If a trace still shows exposed input DMA,
                # add pipeline_mode=pl.Buffered(3) here (and +1 x tile in `need`).
                pl.BlockSpec((bn, c, tm), lambda bi, ti: (bi, 0, ti)),
                pl.BlockSpec((c, c), lambda bi, ti: (0, 0)),   # resident weight
                pl.BlockSpec((c, 1), lambda bi, ti: (0, 0)),   # resident bias
            ],
            out_specs=pl.BlockSpec((bn, c, tm), lambda bi, ti: (bi, 0, ti)),
        ),
        compiler_params=pltpu.CompilerParams(
            dimension_semantics=("parallel", "parallel"),
            vmem_limit_bytes=vmem_limit,
        ),
    )(x3d, w2d, b2d)

    if hw_pad != hw:
        out3d = out3d[:, :, :hw]
    return out3d.reshape(n, c, h, w)      # free reshape back to NCHW


if __name__ == "__main__":
    key = jax.random.PRNGKey(0)
    kx, kw, kb = jax.random.split(key, 3)

    # ---- test 1: small f32 case (module-sized demo), exact f32 path --------
    N, C, H, W = 2, 4, 16, 16
    x = jax.random.normal(kx, (N, C, H, W), dtype=jnp.float32)
    weight = jax.random.normal(kw, (C, C), dtype=jnp.float32) * 0.1
    bias = jax.random.normal(kb, (C,), dtype=jnp.float32) * 0.1

    out = jax.block_until_ready(residual_conv1x1(x, weight, bias))
    ref = jnp.einsum("oc,nchw->nohw", weight, x) + bias.reshape(1, C, 1, 1) + x
    assert out.shape == (N, C, H, W)
    assert jnp.allclose(out, ref, atol=1e-5, rtol=1e-5)

    # ---- test 2: larger C, explicit bf16-MXU path (production large-C path),
    #      small 8x8 map -> also exercises lane padding + batch blocking ------
    N2, C2, H2, W2 = 2, 128, 8, 8
    x2 = jax.random.normal(kx, (N2, C2, H2, W2), dtype=jnp.float32)
    w2 = jax.random.normal(kw, (C2, C2), dtype=jnp.float32) * 0.1
    b2 = jax.random.normal(kb, (C2,), dtype=jnp.float32) * 0.1
    out2 = jax.block_until_ready(
        residual_conv1x1(x2, w2, b2, use_bf16_matmul=True))
    ref2 = jnp.einsum("oc,nchw->nohw", w2, x2) + b2.reshape(1, C2, 1, 1) + x2
    assert out2.shape == (N2, C2, H2, W2)
    assert jnp.allclose(out2, ref2, atol=1e-1, rtol=5e-2)

    # ---- test 3: bf16 activations (weight auto-cast, f32 residual epilogue) -
    x3 = x2.astype(jnp.bfloat16)
    out3 = jax.block_until_ready(residual_conv1x1(x3, w2, b2))
    xf = x3.astype(jnp.float32)
    ref3 = jnp.einsum("oc,nchw->nohw", w2, xf) + b2.reshape(1, C2, 1, 1) + xf
    assert out3.dtype == jnp.bfloat16
    assert jnp.allclose(out3.astype(jnp.float32), ref3, atol=1.5e-1, rtol=1e-1)

    print("KERNEL_OK")
</pallas_src>

<mosaic_0001>
module attributes {stable_mosaic.version = 11 : i64} {
  func.func @_residual_conv1x1_kernel(%arg0: i32, %arg1: i32, %arg2: memref<1x4x256xf32, #tpu.memory_space<vmem>>, %arg3: memref<4x4xf32, #tpu.memory_space<vmem>>, %arg4: memref<4x1xf32, #tpu.memory_space<vmem>>, %arg5: memref<1x4x256xf32, #tpu.memory_space<vmem>>) attributes {dimension_semantics = [#tpu.dimension_semantics<parallel>, #tpu.dimension_semantics<parallel>], iteration_bounds = array<i64: 2, 1>, scalar_prefetch = 0 : i64, scratch_operands = 0 : i64, tpu.core_type = #tpu.core_type<tc>, window_params = [{transform_indices = @transform_0, window_bounds = array<i64: 1, 4, 256>}, {pipeline_mode = #tpu.pipeline_mode<synchronous>, transform_indices = @transform_1, window_bounds = array<i64: 4, 4>}, {pipeline_mode = #tpu.pipeline_mode<synchronous>, transform_indices = @transform_2, window_bounds = array<i64: 4, 1>}, {transform_indices = @transform_3, window_bounds = array<i64: 1, 4, 256>}]} {
    %c0 = arith.constant 0 : index
    %c0_0 = arith.constant 0 : index
    %0 = vector.load %arg3[%c0, %c0_0] : memref<4x4xf32, #tpu.memory_space<vmem>>, vector<4x4xf32>
    %c0_1 = arith.constant 0 : index
    %c0_2 = arith.constant 0 : index
    %1 = vector.load %arg4[%c0_1, %c0_2] : memref<4x1xf32, #tpu.memory_space<vmem>>, vector<4x1xf32>
    %c0_3 = arith.constant 0 : index
    %c0_4 = arith.constant 0 : index
    %c0_5 = arith.constant 0 : index
    %2 = vector.load %arg2[%c0_3, %c0_4, %c0_5] : memref<1x4x256xf32, #tpu.memory_space<vmem>>, vector<1x4x256xf32>
    %3 = vector.shape_cast %2 : vector<1x4x256xf32> to vector<4x256xf32>
    %cst = arith.constant dense<0.000000e+00> : vector<4x256xf32>
    %4 = tpu.matmul %0, %3, %cst {dimension_numbers = #tpu.dot_dimension_numbers<[1], [0], [0], [1], [0, 0, 1, 1], [], []>} : vector<4x4xf32>, vector<4x256xf32>, vector<4x256xf32> -> vector<4x256xf32>
    %5 = arith.addf %4, %3 : vector<4x256xf32>
    %6 = vector.broadcast %1 : vector<4x1xf32> to vector<4x256xf32>
    %7 = arith.addf %5, %6 : vector<4x256xf32>
    %c0_6 = arith.constant 0 : index
    %c0_7 = arith.constant 0 : index
    %c0_8 = arith.constant 0 : index
    %8 = vector.load %arg5[%c0_6, %c0_7, %c0_8] : memref<1x4x256xf32, #tpu.memory_space<vmem>>, vector<1x4x256xf32>
    %9 = vector.shape_cast %8 : vector<1x4x256xf32> to vector<4x256xf32>
    %10 = vector.shape_cast %7 : vector<4x256xf32> to vector<1x4x256xf32>
    tpu.vector_store %arg5[%c0_6, %c0_7, %c0_8], %10 {strides = array<i32>} : memref<1x4x256xf32, #tpu.memory_space<vmem>>, vector<1x4x256xf32>,
    return
  }
  func.func @transform_0(%arg0: i32, %arg1: i32) -> (i32, i32, i32) {
    %c0_i32 = arith.constant 0 : i32
    %c0_i32_0 = arith.constant 0 : i32
    return %arg0, %c0_i32, %arg1 : i32, i32, i32
  }
  func.func @transform_1(%arg0: i32, %arg1: i32) -> (i32, i32) {
    %c0_i32 = arith.constant 0 : i32
    %c0_i32_0 = arith.constant 0 : i32
    %c0_i32_1 = arith.constant 0 : i32
    return %c0_i32, %c0_i32_0 : i32, i32
  }
  func.func @transform_2(%arg0: i32, %arg1: i32) -> (i32, i32) {
    %c0_i32 = arith.constant 0 : i32
    %c0_i32_0 = arith.constant 0 : i32
    %c0_i32_1 = arith.constant 0 : i32
    return %c0_i32, %c0_i32_0 : i32, i32
  }
  func.func @transform_3(%arg0: i32, %arg1: i32) -> (i32, i32, i32) {
    %c0_i32 = arith.constant 0 : i32
    %c0_i32_0 = arith.constant 0 : i32
    return %arg0, %c0_i32, %arg1 : i32, i32, i32
  }
}

</mosaic_0001>

<bundles_post_ra>
// kernel: residual_conv1x1.1
= control target key start
LH: loop header
LB: loop body
LE: loop exit
PB: predicated region body
PF: predicated region fallthrough
CT: control target
= control target key end

     0   :  { %s485_s12 = smov 0   ;;  %s487_s13 = smov 0   ;;  %s524_s0 = inlined_call_operand.vmem [shape: f32[2,4,256], index: 0, kind: input, shape index: {}]   ;;  %s525_s1 = inlined_call_operand.vmem [shape: f32[4,4], index: 1, kind: input, shape index: {}]   ;;  %s526_s2 = inlined_call_operand.vmem [shape: f32[4,1], index: 2, kind: input, shape index: {}]   ;;  %s527_s3 = inlined_call_operand.vmem [shape: f32[2,4,256], index: 3, kind: output, shape index: {}]  }
   0x1   :  { %s489_s14 = smov 0  }
   0x2 LB: > { %s25_s15 = sadd.s32 1, %s457_s13  ;;  %p399_p0 = scmp.ge.s32.totalorder %s461_s14, 1  ;;  %s461_s14 = sphi %s489_s14, %s13_s14   ;;  %s457_s13 = sphi %s487_s13, %s529_s13   ;;  %s453_s12 = sphi %s485_s12, %s528_s12  }
   0x3   : > { %p27_p1 = scmp.ge.s32.totalorder %s25_s15, 2  ;;  %p158_p2 = scmp.lt.s32.totalorder %s461_s14, 3 }
   0x5   : > { %s531_s15 = smov (%p27_p1, %s25_s15), 0  ;;  %p159_p3 = pnand %p399_p0, %p158_p2 }
   0x6   : > { %p191_p4 = scmp.lt.s32.totalorder (!%p159_p3), %s453_s12, 1 }
   0x7   : > { %162 = sbr.rel (%p159_p3) target bundleno = 222 (0xde), region = 32 }
   0xc   : > { %v463_v0 = vmov 0.0   ;;  %v211_v1 = vld [vmem:[%s526_s2] sm:$0xf]  ;;  %s533_s12 = smov (!%p191_p4, %s453_s12), 1  ;;  %v464_v2 = vmov 0   ;;  %vm220_vm0 = vcmask 1043456  }
   0xd   : > { %289 = vmatprep.mubr.f32.mxu0 %v463_v0  ;;  %437 = vset.pattern.permute.xlu0 %v464_v2  ;;  %s409_s18 = sshll.u32 %s533_s12, 3  ;;  %v210_v5 = vld [vmem:[%s525_s1] sm:$0xf]  ;;  %vm216_vm1 = vcmask 31744  }
   0xe   : > { %298 = vperm.xlu0 %437, %v211_v1   ;;  %s198_s21 = scalar_lea.vmem %s524_s0, %s409_s18  ;;  %s208_s26 = scalar_lea.vmem %s527_s3, %s409_s18 }
   0xf   : > { %v212_v3 = vld [vmem:[%s198_s21] sm:$0xff] }
  0x10   : > { %v214_v4 = vcombine.high %v212_v3, %v212_v3 }
  0x12   : > { %404 = vmatprep.subr.msk.mxu0 %vm220_vm0, %v214_v4 }
  0x13   : > { %405 = vmatpush1.msk.msra.mxu0 %vm220_vm0, %v212_v3 }
  0x14   : > { %406 = vmatmul.mubr.msk.f32.vlgmr.msra.gmra.mxu0 %vm216_vm1, %v210_v5 }
  0x89   : > { %v299_v8 = vpop.permute.xlu0 %298 }
  0xd4   : > { %v291_v6 = vpop.f32.mrf.mxu0 }
  0xd5   : > { %v292_v7 = vadd.f32 %v291_v6, %v212_v3 }
  0xd6   : > { %v293_v9 = vpop.f32.mrf.mxu0 }
  0xd7   : > { %v294_v10 = vadd.f32 %v293_v9, %v214_v4  ;;  %v301_v11 = vadd.f32 %v299_v8, %v292_v7 }
  0xd9   : > { %v302_v12 = vadd.f32 %v299_v8, %v294_v10 }
  0xdb   : > { %v305_v13 = vcombine.low %v301_v11, %v302_v12 }
  0xdd   : > { %307 = vst [vmem:[%s208_s26] sm:$0xff] %v305_v13 }
  0xde PF: > { %s13_s14 = sadd.s32 1, %s461_s14   ;;  %s528_s12 = smov %s457_s13 }
  0xdf   : > { %p10_p5 = scmp.ge.s32.totalorder %s13_s14, 4   ;;  %s529_s13 = smov %s531_s15 }
  0xe1   :  { %12 = sbr.rel (!%p10_p5) target bundleno = 2 (0x2), region = 62 }

</bundles_post_ra>
